<compile_context>
chip_gen: v7x
topology: tpu7x:2x2x1
jax: 0.10.0
libtpu: 0.0.40
codegen_flags: <defaults>
</compile_context>

<pallas_src>
import numpy as np
import jax
import jax.numpy as jnp
from jax.experimental import pallas as pl
from jax.experimental.pallas import tpu as pltpu


def _channel_mix_kernel(x_ref, w_ref, b_ref, o_ref):
    # x_ref: (C, T) pixel tile (channels on sublanes, pixels on lanes)
    # w_ref: (C, C) folded weights, b_ref: (C, 1) folded bias
    y = jnp.dot(w_ref[...], x_ref[...], preferred_element_type=jnp.float32)
    o_ref[...] = (y + b_ref[...]).astype(o_ref.dtype)


def _padded_sublanes(c, dtype):
    itemsize = jnp.dtype(dtype).itemsize
    sub = max(8, 32 // itemsize)          # 8 for f32, 16 for bf16, 32 for int8
    return -(-c // sub) * sub


def _pick_pixel_tile(hw, c, dtype, target_tile_bytes=4 << 20,
                     vmem_budget_bytes=40 << 20):
    """Pixel-tile width: multiple of 128 lanes, sized on the *padded* (C,T)
    footprint, and small enough that 2x(in+out) double-buffered tiles fit the
    VMEM budget.  Full extent if the image is small."""
    itemsize = jnp.dtype(dtype).itemsize
    bytes_per_col = _padded_sublanes(c, dtype) * itemsize
    t_target = (target_tile_bytes // bytes_per_col) // 128 * 128
    t_budget = (vmem_budget_bytes // (4 * bytes_per_col)) // 128 * 128
    t = max(128, min(t_target, t_budget))
    return hw if hw <= t else t


def _vmem_limit_bytes(tile_pixels, c, dtype):
    itemsize = jnp.dtype(dtype).itemsize
    lanes = -(-tile_pixels // 128) * 128
    tile_bytes = _padded_sublanes(c, dtype) * lanes * itemsize
    # in + out, each double-buffered, plus (tiny) constants and headroom.
    footprint = 4 * tile_bytes + 2 * _padded_sublanes(c, dtype) * 128 * itemsize
    return int(min(max(footprint + (4 << 20), 16 << 20), 64 << 20))


def _run_channel_mix(x3, w_eff, b_col, *, tile_pixels=None):
    n, c, hw = x3.shape
    if tile_pixels is None:
        tile_pixels = _pick_pixel_tile(hw, c, x3.dtype)
    grid = (n, pl.cdiv(hw, tile_pixels))
    return pl.pallas_call(
        _channel_mix_kernel,
        out_shape=jax.ShapeDtypeStruct((n, c, hw), x3.dtype),
        grid_spec=pltpu.PrefetchScalarGridSpec(
            num_scalar_prefetch=0,
            grid=grid,
            in_specs=[
                # batch dim squeezed; kernel sees a (C, tile_pixels) slab
                pl.BlockSpec((None, c, tile_pixels), lambda i, p: (i, 0, p)),
                pl.BlockSpec((c, c), lambda i, p: (0, 0)),
                pl.BlockSpec((c, 1), lambda i, p: (0, 0)),
            ],
            out_specs=pl.BlockSpec((None, c, tile_pixels), lambda i, p: (i, 0, p)),
        ),
        compiler_params=pltpu.CompilerParams(
            dimension_semantics=("parallel", "parallel"),
            vmem_limit_bytes=_vmem_limit_bytes(tile_pixels, c, x3.dtype),
        ),
    )(x3, w_eff, b_col)


def drop_path_forward(x_nchw, w, b, *, drop_rate, training, uniform_sample=None):
    """DropPath(drop_rate, module=1x1-conv) forward. x_nchw: (N, C, H, W)."""
    if training:
        if uniform_sample is None:
            # host-side Bernoulli, matching torch's np.random.rand() semantics
            uniform_sample = float(np.random.rand())
        if uniform_sample < drop_rate:
            return x_nchw                              # skip the module entirely
        factor = 1.0 / (1.0 - drop_rate)
    else:
        factor = 1.0

    N, C, H, W = x_nchw.shape
    # Fold the DropPath blend into the conv parameters (host-side, O(C^2)):
    #   out = x + factor*(Wx + b - x) = ((1-factor)I + factor*W) x + factor*b
    eye = jnp.eye(C, dtype=jnp.float32)
    w_eff = (factor * w.astype(jnp.float32) + (1.0 - factor) * eye).astype(w.dtype)
    b_eff = (factor * b.astype(jnp.float32)).astype(b.dtype)

    x3 = x_nchw.reshape(N, C, H * W)       # free contiguous view, no transpose
    out3 = _run_channel_mix(x3, w_eff, b_eff.reshape(C, 1))
    return out3.reshape(N, C, H, W)


if __name__ == "__main__":
    key = jax.random.PRNGKey(0)
    kx, kw, kb = jax.random.split(key, 3)

    N, C, H, W = 2, 4, 16, 16
    x = jax.random.normal(kx, (N, C, H, W), dtype=jnp.float32)
    # deterministic parameters for the wrapped 1x1-conv module
    w = jax.random.normal(kw, (C, C), dtype=jnp.float32) * 0.1
    b = jax.random.normal(kb, (C,), dtype=jnp.float32) * 0.1

    drop_rate = 0.1
    # deterministic host-side drop decision (matches torch's np.random.rand())
    uniform_sample = float(np.random.RandomState(0).rand())

    out = drop_path_forward(
        x, w, b, drop_rate=drop_rate, training=True, uniform_sample=uniform_sample
    )
    out = jax.block_until_ready(out)

    # plain-JAX reference with the same drop decision (training path)
    if uniform_sample < drop_rate:
        ref = x
    else:
        factor = 1.0 / (1.0 - drop_rate)
        x3 = x.reshape(N, C, H * W)
        new = jnp.einsum("oc,ncp->nop", w, x3) + b[None, :, None]
        ref = (x3 + factor * (new - x3)).reshape(N, C, H, W)

    assert out.shape == x.shape and out.dtype == x.dtype
    assert jnp.allclose(out, ref, atol=1e-4, rtol=1e-4)

    # eval path: factor == 1.0 must return exactly module(x)
    out_eval = jax.block_until_ready(
        drop_path_forward(x, w, b, drop_rate=drop_rate, training=False)
    )
    ref_eval = (
        jnp.einsum("oc,ncp->nop", w, x.reshape(N, C, H * W)) + b[None, :, None]
    ).reshape(N, C, H, W)
    assert jnp.allclose(out_eval, ref_eval, atol=1e-4, rtol=1e-4)

    # drop branch: inputs returned untouched
    out_drop = drop_path_forward(
        x, w, b, drop_rate=drop_rate, training=True, uniform_sample=0.0
    )
    assert jnp.array_equal(jax.block_until_ready(out_drop), x)

    print("KERNEL_OK")
</pallas_src>

<mosaic_0001>
module attributes {stable_mosaic.version = 11 : i64} {
  func.func @_channel_mix_kernel(%arg0: i32, %arg1: i32, %arg2: memref<1x4x256xf32, #tpu.memory_space<vmem>>, %arg3: memref<4x4xf32, #tpu.memory_space<vmem>>, %arg4: memref<4x1xf32, #tpu.memory_space<vmem>>, %arg5: memref<1x4x256xf32, #tpu.memory_space<vmem>>) attributes {dimension_semantics = [#tpu.dimension_semantics<parallel>, #tpu.dimension_semantics<parallel>], iteration_bounds = array<i64: 2, 1>, scalar_prefetch = 0 : i64, scratch_operands = 0 : i64, tpu.core_type = #tpu.core_type<tc>, window_params = [{transform_indices = @transform_0, window_bounds = array<i64: 1, 4, 256>}, {pipeline_mode = #tpu.pipeline_mode<synchronous>, transform_indices = @transform_1, window_bounds = array<i64: 4, 4>}, {pipeline_mode = #tpu.pipeline_mode<synchronous>, transform_indices = @transform_2, window_bounds = array<i64: 4, 1>}, {transform_indices = @transform_3, window_bounds = array<i64: 1, 4, 256>}]} {
    %c0 = arith.constant 0 : index
    %c0_0 = arith.constant 0 : index
    %0 = vector.load %arg3[%c0, %c0_0] : memref<4x4xf32, #tpu.memory_space<vmem>>, vector<4x4xf32>
    %c0_1 = arith.constant 0 : index
    %c0_2 = arith.constant 0 : index
    %c0_3 = arith.constant 0 : index
    %1 = vector.load %arg2[%c0_1, %c0_2, %c0_3] : memref<1x4x256xf32, #tpu.memory_space<vmem>>, vector<1x4x256xf32>
    %2 = vector.shape_cast %1 : vector<1x4x256xf32> to vector<4x256xf32>
    %cst = arith.constant dense<0.000000e+00> : vector<4x256xf32>
    %3 = tpu.matmul %0, %2, %cst {dimension_numbers = #tpu.dot_dimension_numbers<[1], [0], [0], [1], [0, 0, 1, 1], [], []>} : vector<4x4xf32>, vector<4x256xf32>, vector<4x256xf32> -> vector<4x256xf32>
    %c0_4 = arith.constant 0 : index
    %c0_5 = arith.constant 0 : index
    %4 = vector.load %arg4[%c0_4, %c0_5] : memref<4x1xf32, #tpu.memory_space<vmem>>, vector<4x1xf32>
    %5 = vector.broadcast %4 : vector<4x1xf32> to vector<4x256xf32>
    %6 = arith.addf %3, %5 : vector<4x256xf32>
    %c0_6 = arith.constant 0 : index
    %c0_7 = arith.constant 0 : index
    %c0_8 = arith.constant 0 : index
    %7 = vector.load %arg5[%c0_6, %c0_7, %c0_8] : memref<1x4x256xf32, #tpu.memory_space<vmem>>, vector<1x4x256xf32>
    %8 = vector.shape_cast %7 : vector<1x4x256xf32> to vector<4x256xf32>
    %9 = vector.shape_cast %6 : vector<4x256xf32> to vector<1x4x256xf32>
    tpu.vector_store %arg5[%c0_6, %c0_7, %c0_8], %9 {strides = array<i32>} : memref<1x4x256xf32, #tpu.memory_space<vmem>>, vector<1x4x256xf32>,
    return
  }
  func.func @transform_0(%arg0: i32, %arg1: i32) -> (i32, i32, i32) {
    %c0_i32 = arith.constant 0 : i32
    %c0_i32_0 = arith.constant 0 : i32
    return %arg0, %c0_i32, %arg1 : i32, i32, i32
  }
  func.func @transform_1(%arg0: i32, %arg1: i32) -> (i32, i32) {
    %c0_i32 = arith.constant 0 : i32
    %c0_i32_0 = arith.constant 0 : i32
    %c0_i32_1 = arith.constant 0 : i32
    return %c0_i32, %c0_i32_0 : i32, i32
  }
  func.func @transform_2(%arg0: i32, %arg1: i32) -> (i32, i32) {
    %c0_i32 = arith.constant 0 : i32
    %c0_i32_0 = arith.constant 0 : i32
    %c0_i32_1 = arith.constant 0 : i32
    return %c0_i32, %c0_i32_0 : i32, i32
  }
  func.func @transform_3(%arg0: i32, %arg1: i32) -> (i32, i32, i32) {
    %c0_i32 = arith.constant 0 : i32
    %c0_i32_0 = arith.constant 0 : i32
    return %arg0, %c0_i32, %arg1 : i32, i32, i32
  }
}

</mosaic_0001>

<bundles_post_ra>
// kernel: tpu_custom_call.1
= control target key start
LH: loop header
LB: loop body
LE: loop exit
PB: predicated region body
PF: predicated region fallthrough
CT: control target
= control target key end

     0   :  { %8 = vsyncpa [#allocation3], 0  ;;  %s805_s0 = inlined_call_operand.hbm [shape: f32[2,4,256], index: 0, kind: input, shape index: {}]   ;;  %s806_s1 = inlined_call_operand.vmem [shape: f32[4,4], index: 1, kind: input, shape index: {}]   ;;  %s807_s2 = inlined_call_operand.vmem [shape: f32[4,1], index: 2, kind: input, shape index: {}]   ;;  %s808_s3 = inlined_call_operand.hbm [shape: f32[2,4,256], index: 3, kind: output, shape index: {}]  }
   0x1   :  { %10 = vsyncpa [#allocation3 + $0x1], 0 }
   0x2   :  { %11 = vsyncpa [#allocation4], 0 }
   0x3   :  { %13 = vsyncpa [#allocation4 + $0x1], 0  ;;  %s627_s12 = smov 0   ;;  %s629_s13 = smov 0  }
   0x4   :  { %s631_s14 = smov 0   ;;  %s633_s15 = smov 0  }
   0x5   :  { %s635_s16 = smov 0   ;;  %s637_s17 = smov 0  }
   0x6 LB: > { %s403_s18 = sadd.s32 4294967295, %s601_s17   ;;  %s404_s19 = sadd.s32 4294967294, %s601_s17   ;;  %s601_s17 = sphi %s637_s17, %s19_s17   ;;  %s597_s16 = sphi %s635_s16, %s824_s16   ;;  %s593_s15 = sphi %s633_s15, %s823_s15   ;;  %s589_s14 = sphi %s631_s14, %s822_s14   ;;  %s585_s13 = sphi %s629_s13, %s821_s13   ;;  %s581_s12 = sphi %s627_s12, %s820_s12  }
   0x7   : > { %s31_s20 = sadd.s32 1, %s597_s16  ;;  %s40_s21 = sadd.s32 1, %s589_s14 }
   0x8   : > { %p33_p0 = scmp.ge.s32.totalorder %s31_s20, 2  ;;  %p47_p1 = scmp.ne.s32.totalorder %s589_s14, %s585_s13 }
   0x9   : > { %p48_p2 = scmp.eq.s32.totalorder %s601_s17, 0  ;;  %p53_p3 = scmp.ne.s32.totalorder %s585_s13, %s581_s12 }
   0xa   : > { %s826_s20 = smov (%p33_p0, %s31_s20), 0  ;;  %p54_p5 = scmp.eq.s32.totalorder %s403_s18, 0 }
   0xb   : > { %p668_p4 = por %p48_p2, %p47_p1  ;;  %s35_s23 = ssub.s32 %s597_s16, %s826_s20 }
   0xc   : > { %p121_p6 = scmp.eq.s32.totalorder %s403_s18, 1  ;;  %p38_p7 = scmp.eq.s32.totalorder %s35_s23, 0 }
   0xd   : > { %p674_p8 = por %p54_p5, %p53_p3  ;;  %p127_p10 = scmp.eq.s32.totalorder %s404_s19, 1 }
   0xe   : > { %p678_p9 = por %p121_p6, %p47_p1  ;;  %p435_p13 = scmp.lt.s32.totalorder %s601_s17, 2 }
   0xf   : > { %s683_s26 = scalar_select %p38_p7, %s589_s14, %s40_s21  }
  0x10   : > { %s812_s25 = scalar_select %p678_p9, 1, 0 }
  0x11   : > { %p685_p11 = por %p127_p10, %p53_p3  ;;  %s153_s28 = sand.u32 1, %s589_s14  }
  0x12   : > { %s407_s29 = sshll.u32 %s153_s28, 3  ;;  %s421_s30 = sshll.u32 %s597_s16, 7 }
  0x13   : > { %s813_s27 = scalar_select %p685_p11, 1, 0 }
  0x14   : > { %s696_s6 = scalar_lea.hbm %s805_s0, %s421_s30  ;;  %s157_s7 = scalar_lea.vmem [#allocation2], %s407_s29 }
  0x15   : > { %s167_s8 = sshll.u32 %s157_s7, 4  ;;  %p702_p0 = pnand %p435_p13, %p668_p4  ;;  %s698_s8 = int_to_ptr.vmem [resolvable:$true] %s167_s8 }
  0x16   : > { %s154_s10 = scalar_lea.sflag [#allocation3], %s153_s28  ;;  %s489_s11 = scalar_lea.hbm %s696_s6, 128 }
  0x17   : > { %p490_p3 = scmp.ne.s32.totalorder %s696_s6, %s489_s11  ;;  %p491_p5 = pneg %p702_p0 }
  0x18   : > { %s494_s21 = scalar_lea.hbm %s805_s0, 256  ;;  %p495_p4 = scmp.lt.u32.totalorder %s696_s6, %s805_s0 }
  0x19   : > { %p492_p6 = pnand %p491_p5, %p490_p3  ;;  %p496_p10 = scmp.lt.u32.totalorder %s494_s21, %s489_s11 }
  0x1a   : > { %p498_p12 = scmp.lt.u32.totalorder %s489_s11, %s696_s6 }
  0x1b   : > { %p493_p7 = pneg %p492_p6  ;;  %p497_p13 = por %p496_p10, %p495_p4 }
  0x1d   : > { %p499_p1 = por %p498_p12, %p497_p13 }
  0x1f   : > { %p500_p2 = pnand %p499_p1, %p493_p7 }
  0x21   : > { %503 = shalt.err (!%p500_p2)
}
  0x22   : > { %s504_s28 = scalar_lea.vmem %s698_s8, 128  ;;  %s603_s29 = smov [#allocation2]  }
  0x23   : > { %p505_p3 = scmp.ne.s32.totalorder %s698_s8, %s504_s28  ;;  %s509_s30 = sshll.u32 %s603_s29, 4  ;;  %s510_s30 = int_to_ptr.vmem [resolvable:$false] %s509_s30 }
  0x24   : > { %s511_s4 = scalar_lea.vmem %s510_s30, 256  ;;  %p512_p9 = scmp.lt.s32.totalorder %s698_s8, %s510_s30 }
  0x25   : > { %p507_p6 = pnand %p505_p3, %p491_p5  ;;  %p513_p4 = scmp.lt.s32.totalorder %s511_s4, %s504_s28 }
  0x27   : > { %p508_p11 = pneg %p507_p6  ;;  %p514_p10 = por %p513_p4, %p512_p9 }
  0x29   : > { %p515_p12 = pnand %p514_p10, %p508_p11 }
  0x2b   : > { %518 = shalt.err (!%p515_p12)
}
  0x2c   : > { %430 = dma.hbm_to_vmem [thread:$0]  (!%p702_p0), %s696_s6, 128, %s698_s8, %s154_s10  }
  0x2d   : > { %p815_p1 = scmp.lt.s32.totalorder %s601_s17, 3  ;;  %p816_p2 = scmp.ge.s32.totalorder %s601_s17, 1 }
  0x2f   : > { %p173_p5 = pnand %p816_p2, %p815_p1 }
  0x30   : > { %s738_s5 = sand.u32 (!%p173_p5), 1, %s585_s13  }
  0x31   : > { %176 = sbr.rel (%p173_p5) target bundleno = 293 (0x125), region = 32  ;;  %s411_s7 = sshll.u32 (!%p173_p5), %s738_s5, 3 }
  0x32   : > { %s179_s11 = scalar_lea.sflag (!%p173_p5), [#allocation3], %s738_s5  ;;  %s182_s18 = scalar_lea.vmem (!%p173_p5), [#allocation2], %s411_s7 }
  0x38   : > { %572 = dma.done.wait (%p674_p8), %s179_s11, 128  }
  0x39   : > { %574 = vsyncadd (%p674_p8), %s179_s11, 4294967168  ;;  %v604_v0 = vmov 0.0   ;;  %v605_v1 = vmov 0   ;;  %v208_v2 = vld [vmem:[%s182_s18] sm:$0xff]  ;;  %vm221_vm0 = vcmask 1043456   ;;  %vm217_vm1 = vcmask 31744  }
  0x3a   : > { %290 = vmatprep.mubr.f32.mxu0 %v604_v0  ;;  %487 = vset.pattern.permute.xlu0 %v605_v1  ;;  %v209_v3 = vld [vmem:[%s807_s2] sm:$0xf]  ;;  %v216_v4 = vcombine.high %v208_v2, %v208_v2  ;;  %s422_s24 = sshll.u32 %s593_s15, 7  ;;  %s204_s19 = scalar_lea.vmem [#allocation5], %s411_s7 }
  0x3b   : > { %212 = vperm.xlu0 %487, %v209_v3   ;;  %v207_v5 = vld [vmem:[%s806_s1] sm:$0xf]  ;;  %s319_s21 = sshll.u32 %s204_s19, 4  ;;  %s756_s28 = scalar_lea.hbm %s808_s3, %s422_s24  ;;  %s758_s21 = int_to_ptr.vmem [resolvable:$true] %s319_s21 }
  0x3c   : > { %413 = vmatprep.subr.msk.mxu0 %vm221_vm0, %v216_v4  ;;  %s303_s29 = scalar_lea.sflag [#allocation4], %s738_s5  ;;  %s519_s30 = scalar_lea.vmem %s758_s21, 128 }
  0x3d   : > { %414 = vmatpush1.msk.msra.mxu0 %vm221_vm0, %v208_v2  ;;  %p520_p8 = scmp.ne.s32.totalorder %s758_s21, %s519_s30  ;;  %p817_p9 = scmp.ne.s32.totalorder %s812_s25, 0 }
  0x3e   : > { %415 = vmatmul.mubr.msk.f32.vlgmr.msra.gmra.mrb[0].mxu0 %vm217_vm1, %v207_v5  ;;  %s606_s15 = smov [#allocation5]  }
  0x3f   : > { %p521_p11 = pnand %p520_p8, %p817_p9  ;;  %s523_s4 = sshll.u32 %s606_s15, 4  ;;  %s524_s4 = int_to_ptr.vmem [resolvable:$false] %s523_s4 }
  0x40   : > { %s525_s7 = scalar_lea.vmem %s524_s4, 256  ;;  %p526_p7 = scmp.lt.s32.totalorder %s758_s21, %s524_s4 }
  0x41   : > { %p522_p0 = pneg %p521_p11  ;;  %p527_p13 = scmp.lt.s32.totalorder %s525_s7, %s519_s30 }
  0x43   : > { %p528_p3 = por %p527_p13, %p526_p7 }
  0x45   : > { %p529_p6 = pnand %p528_p3, %p522_p0 }
  0xba   : > { %v213_v6 = vpop.permute.xlu0 %212 }
 0x111   : > { %v292_v7 = vpop.f32.mrb[0].mxu0 }
 0x112   : > { %v293_v8 = vadd.f32 %v292_v7, %v213_v6  ;;  %v294_v9 = vpop.f32.mrb[1].mxu0 }
 0x113   : > { %v295_v10 = vadd.f32 %v294_v9, %v213_v6 }
 0x115   : > { %v299_v11 = vcombine.low %v293_v8, %v295_v10 }
 0x117   : > { %301 = vst [vmem:[%s204_s19] sm:$0xff] %v299_v11 }
 0x118   : > { %532 = shalt.err (!%p529_p6)
}
 0x119   : > { %s533_s5 = scalar_lea.hbm %s756_s28, 128  ;;  %s537_s6 = scalar_lea.hbm %s808_s3, 256 }
 0x11a   : > { %p534_p4 = scmp.ne.s32.totalorder %s756_s28, %s533_s5  ;;  %p538_p1 = scmp.lt.u32.totalorder %s756_s28, %s808_s3 }
 0x11b   : > { %p539_p2 = scmp.lt.u32.totalorder %s537_s6, %s533_s5  ;;  %p541_p8 = scmp.lt.u32.totalorder %s533_s5, %s756_s28 }
 0x11c   : > { %p535_p10 = pnand %p534_p4, %p817_p9 }
 0x11d   : > { %p540_p5 = por %p539_p2, %p538_p1 }
 0x11e   : > { %p536_p12 = pneg %p535_p10 }
 0x11f   : > { %p542_p11 = por %p541_p8, %p540_p5 }
 0x121   : > { %p543_p0 = pnand %p542_p11, %p536_p12 }
 0x123   : > { %546 = shalt.err (!%p543_p0)
}
 0x124   : > { %425 = dma.vmem_to_hbm [thread:$0]  (%p817_p9), %s758_s21, 128, %s756_s28, %s303_s29  }
 0x125 PF: > { %s331_s10 = sand.u32 1, %s581_s12   ;;  %p818_p7 = scmp.ne.s32.totalorder %s813_s27, 0 }
 0x126   : > { %p819_p13 = scmp.ge.s32.totalorder %s601_s17, 2  ;;  %s332_s24 = scalar_lea.sflag [#allocation4], %s331_s10 }
 0x128   : > { %p432_p3 = pnand %p819_p13, %p818_p7 }
 0x12a   : > { %576 = dma.done.wait (!%p432_p3), %s332_s24, 128  }
 0x12b   : > { %578 = vsyncadd (!%p432_p3), %s332_s24, 4294967168  ;;  %s19_s17 = sadd.s32 1, %s601_s17   ;;  %s820_s12 = smov %s585_s13 }
 0x12c   : > { %p16_p6 = scmp.ge.s32.totalorder %s19_s17, 4   ;;  %s821_s13 = smov %s589_s14 }
 0x12d   : > { %s822_s14 = smov %s683_s26  ;;  %s823_s15 = smov %s597_s16 }
 0x12e   : > { %s824_s16 = smov %s826_s20  ;;  %18 = sbr.rel (!%p16_p6) target bundleno = 6 (0x6), region = 77 }
 0x135   :  { %337 = vsyncpa [#allocation3], 1 }
 0x136   :  { %339 = vsyncpa [#allocation3 + $0x1], 1 }
 0x137   :  { %340 = vsyncpa [#allocation4], 1 }
 0x138   :  { %342 = vsyncpa [#allocation4 + $0x1], 1 }

</bundles_post_ra>
